<compile_context>
chip_gen: v5e
topology: v5e:2x2
jax: 0.10.0
libtpu: 0.0.40
codegen_flags: <defaults>
</compile_context>

<pallas_src>
import jax
import jax.numpy as jnp
from jax.experimental import pallas as pl
from jax.experimental.pallas import tpu as pltpu

_LANE = 128
_SUBLANE = 16  # multiple of 8 (f32 tiling) and 16 (bf16 sublane packing)


def _mixup_kernel(perm_ref, coeff_ref, x_ref, xperm_ref, o_ref):
    # perm_ref is consumed only by the index_maps (data-dependent HBM gather).
    del perm_ref
    i = pl.program_id(0)                       # batch row for this grid step
    c = coeff_ref[i]                           # f32 scalar from SMEM
    x = x_ref[...].astype(jnp.float32)         # (1, tr, 128) own row chunk
    xp = xperm_ref[...].astype(jnp.float32)    # (1, tr, 128) permuted row chunk
    o_ref[...] = (c * x + (1.0 - c) * xp).astype(o_ref.dtype)


def _mixup_rows_aligned(x3, perm, coeffs, *, row_tile):
    """out[i] = coeffs[i]*x3[i] + (1-coeffs[i])*x3[perm[i]] for lane-dense (bs, r, 128) x3."""
    bs, r, _ = x3.shape
    dtype = x3.dtype

    # Enforce the (8,128) rule in code: tr is either the full extent r, or a multiple
    # of 16 (with a Pallas-masked partial edge chunk when tr does not divide r).
    row_tile = max(_SUBLANE, -(-int(row_tile) // _SUBLANE) * _SUBLANE)
    if r <= row_tile:
        tr, n_chunks = r, 1
    else:
        tr, n_chunks = row_tile, pl.cdiv(r, row_tile)

    n_elems = bs * r * _LANE
    itemsize = jnp.dtype(dtype).itemsize
    cost = pl.CostEstimate(
        flops=3 * n_elems,                     # 2 mul + 1 add per element
        transcendentals=0,
        bytes_accessed=3 * n_elems * itemsize, # 2 reads + 1 write, native dtype
    )

    return pl.pallas_call(
        _mixup_kernel,
        out_shape=jax.ShapeDtypeStruct((bs, r, _LANE), dtype),
        grid_spec=pltpu.PrefetchScalarGridSpec(
            num_scalar_prefetch=2,             # perm, coeffs -> SMEM, fed to index_maps
            grid=(bs, n_chunks),
            in_specs=[
                # own row i, chunk j
                pl.BlockSpec((1, tr, _LANE), lambda i, j, perm_ref, cf_ref: (i, j, 0)),
                # permuted row perm[i], chunk j — gathered straight from HBM
                pl.BlockSpec((1, tr, _LANE),
                             lambda i, j, perm_ref, cf_ref: (perm_ref[i], j, 0)),
            ],
            out_specs=pl.BlockSpec((1, tr, _LANE),
                                   lambda i, j, perm_ref, cf_ref: (i, j, 0)),
        ),
        compiler_params=pltpu.CompilerParams(
            dimension_semantics=("parallel", "parallel"),
            vmem_limit_bytes=32 * 1024 * 1024,
        ),
        cost_estimate=cost,
    )(perm, coeffs, x3, x3)


def _mixup_X(X, perm, coeffs, *, row_tile):
    """Blend the (large) X tensor; kernel on the 128-aligned bulk, jnp on any tail."""
    bs = X.shape[0]
    flat = X.reshape(bs, -1)                   # free reshape (contiguous collapse)
    d = flat.shape[1]
    d_bulk = (d // _LANE) * _LANE
    cX = coeffs.reshape(bs, 1)

    if d_bulk == d and d > 0:
        # Fully 128-aligned: zero wrapper copies (reshapes only), everything in-kernel.
        out = _mixup_rows_aligned(flat.reshape(bs, d // _LANE, _LANE),
                                  perm, coeffs, row_tile=row_tile)
        return out.reshape(X.shape)

    if d_bulk == 0:
        # Tiny feature dim (< 128): a kernel launch costs more than the work.
        mixed = cX * flat.astype(jnp.float32) + (1.0 - cX) * flat[perm].astype(jnp.float32)
        return mixed.astype(X.dtype).reshape(X.shape)

    # 128-aligned bulk in the kernel; <=127-column tail in plain jnp (no full-array pad).
    bulk = _mixup_rows_aligned(flat[:, :d_bulk].reshape(bs, d_bulk // _LANE, _LANE),
                               perm, coeffs, row_tile=row_tile).reshape(bs, d_bulk)
    tail = flat[:, d_bulk:]
    tail = (cX * tail.astype(jnp.float32)
            + (1.0 - cX) * tail[perm].astype(jnp.float32)).astype(X.dtype)
    return jnp.concatenate([bulk, tail], axis=1).reshape(X.shape)


def mixup_pallas(X, Y, perm, coeffs, weight=None, *, row_tile=8192):
    """Deterministic Mixup given a permutation and Beta coefficients.

    Mirrors Mixup.forward for X with 2, 3 or 4 dims (flattened per batch row).
    Only X (the big tensor) goes through the Pallas kernel; Y / weight are tiny and
    are blended with plain jnp in the wrapper.
    """
    bs = X.shape[0]
    perm = perm.astype(jnp.int32)
    coeffs = coeffs.astype(jnp.float32)

    X_mixed = _mixup_X(X, perm, coeffs, row_tile=row_tile)

    cY = coeffs.reshape(bs, 1)
    Y_mixed = (cY * Y.astype(jnp.float32)
               + (1.0 - cY) * Y[perm].astype(jnp.float32)).astype(Y.dtype)
    if weight is None:
        return X_mixed, Y_mixed
    w_mixed = (coeffs * weight.astype(jnp.float32)
               + (1.0 - coeffs) * weight[perm].astype(jnp.float32)).astype(weight.dtype)
    return X_mixed, Y_mixed, w_mixed


def sample_mixup_params(key, bs, mix_beta):
    """torch.randperm + Beta(mix_beta, mix_beta).rsample equivalents (jax.random)."""
    # TODO(synk): module samples on every forward; here the RNG lives in the wrapper.
    k_perm, k_beta = jax.random.split(key)
    perm = jax.random.permutation(k_perm, bs).astype(jnp.int32)
    coeffs = jax.random.beta(k_beta, mix_beta, mix_beta, shape=(bs,)).astype(jnp.float32)
    return perm, coeffs


def mixup_ref(X, Y, perm, coeffs, weight=None):
    # pure-JAX reference mirroring the PyTorch module for identical perm/coeffs
    cX = coeffs.reshape((X.shape[0],) + (1,) * (X.ndim - 1))
    X_mixed = cX * X + (1.0 - cX) * X[perm]
    cY = coeffs.reshape(-1, 1)
    Y_mixed = cY * Y + (1.0 - cY) * Y[perm]
    if weight is None:
        return X_mixed, Y_mixed
    w_mixed = coeffs * weight + (1.0 - coeffs) * weight[perm]
    return X_mixed, Y_mixed, w_mixed


if __name__ == "__main__":
    key = jax.random.PRNGKey(0)
    k_x, k_y, k_w, k_mix, k_x2, k_x3 = jax.random.split(key, 6)
    mix_beta = 1.0

    # Case 1: module's 4-D path, f32, 128-aligned feature dim (d = 4*16*16 = 1024).
    bs, C, H, W = 2, 4, 16, 16
    n_classes = 24
    X = jax.random.uniform(k_x, (bs, C, H, W), dtype=jnp.float32)
    Y = jax.random.uniform(k_y, (bs, n_classes), dtype=jnp.float32)
    weight = jax.random.uniform(k_w, (bs,), dtype=jnp.float32)
    perm, coeffs = sample_mixup_params(k_mix, bs, mix_beta)

    Xm, Ym, wm = jax.block_until_ready(mixup_pallas(X, Y, perm, coeffs, weight=weight))
    Xr, Yr, wr = mixup_ref(X, Y, perm, coeffs, weight=weight)
    assert Xm.shape == X.shape and Ym.shape == Y.shape and wm.shape == weight.shape
    assert jnp.allclose(Xm, Xr, rtol=1e-5, atol=1e-6)
    assert jnp.allclose(Ym, Yr, rtol=1e-5, atol=1e-6)
    assert jnp.allclose(wm, wr, rtol=1e-5, atol=1e-6)

    # Case 2: bf16 activations (module's 3-D path), 128-aligned.
    bs2 = 4
    Xb = jax.random.uniform(k_x2, (bs2, 8, 256), dtype=jnp.float32).astype(jnp.bfloat16)
    Yb = jax.random.uniform(k_y, (bs2, n_classes), dtype=jnp.float32).astype(jnp.bfloat16)
    perm2, coeffs2 = sample_mixup_params(jax.random.fold_in(k_mix, 1), bs2, mix_beta)
    Xbm, Ybm = jax.block_until_ready(mixup_pallas(Xb, Yb, perm2, coeffs2))
    Xbr, Ybr = mixup_ref(Xb, Yb, perm2, coeffs2)
    assert jnp.allclose(Xbm.astype(jnp.float32), Xbr.astype(jnp.float32), rtol=2e-2, atol=2e-2)
    assert jnp.allclose(Ybm.astype(jnp.float32), Ybr.astype(jnp.float32), rtol=2e-2, atol=2e-2)

    # Case 3: non-128-aligned feature dim (module's 2-D path): aligned bulk + jnp tail.
    bs3 = 3
    X3 = jax.random.uniform(k_x3, (bs3, 300), dtype=jnp.float32)
    Y3 = jax.random.uniform(k_y, (bs3, n_classes), dtype=jnp.float32)
    perm3, coeffs3 = sample_mixup_params(jax.random.fold_in(k_mix, 2), bs3, mix_beta)
    X3m, Y3m = jax.block_until_ready(mixup_pallas(X3, Y3, perm3, coeffs3))
    X3r, Y3r = mixup_ref(X3, Y3, perm3, coeffs3)
    assert jnp.allclose(X3m, X3r, rtol=1e-5, atol=1e-6)
    assert jnp.allclose(Y3m, Y3r, rtol=1e-5, atol=1e-6)

    # Case 4: multi-chunk grid with a partial edge chunk (r = 20 lane-rows, tr = 16).
    X4 = jax.random.uniform(jax.random.fold_in(k_x3, 7), (2, 20 * 128), dtype=jnp.float32)
    Y4 = jax.random.uniform(k_y, (2, n_classes), dtype=jnp.float32)
    perm4, coeffs4 = sample_mixup_params(jax.random.fold_in(k_mix, 3), 2, mix_beta)
    X4m, _ = jax.block_until_ready(mixup_pallas(X4, Y4, perm4, coeffs4, row_tile=16))
    X4r, _ = mixup_ref(X4, Y4, perm4, coeffs4)
    assert jnp.allclose(X4m, X4r, rtol=1e-5, atol=1e-6)

    print("KERNEL_OK")
</pallas_src>

<mosaic_0001>
module attributes {stable_mosaic.version = 11 : i64} {
  func.func @_mixup_kernel(%arg0: i32, %arg1: i32, %arg2: memref<2xi32, #tpu.memory_space<smem>>, %arg3: memref<2xf32, #tpu.memory_space<smem>>, %arg4: memref<1x8x128xf32, #tpu.memory_space<vmem>>, %arg5: memref<1x8x128xf32, #tpu.memory_space<vmem>>, %arg6: memref<1x8x128xf32, #tpu.memory_space<vmem>>) attributes {dimension_semantics = [#tpu.dimension_semantics<parallel>, #tpu.dimension_semantics<parallel>], iteration_bounds = array<i64: 2, 1>, scalar_prefetch = 2 : i64, scratch_operands = 0 : i64, tpu.core_type = #tpu.core_type<tc>, window_params = [{transform_indices = @transform_0, window_bounds = array<i64: 1, 8, 128>}, {transform_indices = @transform_1, window_bounds = array<i64: 1, 8, 128>}, {transform_indices = @transform_2, window_bounds = array<i64: 1, 8, 128>}]} {
    %0 = arith.index_cast %arg0 : i32 to index
    %1 = memref.load %arg3[%0] : memref<2xf32, #tpu.memory_space<smem>>
    %c0 = arith.constant 0 : index
    %c0_0 = arith.constant 0 : index
    %c0_1 = arith.constant 0 : index
    %2 = vector.load %arg4[%c0, %c0_0, %c0_1] : memref<1x8x128xf32, #tpu.memory_space<vmem>>, vector<1x8x128xf32>
    %c0_2 = arith.constant 0 : index
    %c0_3 = arith.constant 0 : index
    %c0_4 = arith.constant 0 : index
    %3 = vector.load %arg5[%c0_2, %c0_3, %c0_4] : memref<1x8x128xf32, #tpu.memory_space<vmem>>, vector<1x8x128xf32>
    %4 = vector.broadcast %1 : f32 to vector<1x8x128xf32>
    %5 = arith.mulf %4, %2 : vector<1x8x128xf32>
    %cst = arith.constant 1.000000e+00 : f32
    %6 = arith.subf %cst, %1 : f32
    %7 = vector.broadcast %6 : f32 to vector<1x8x128xf32>
    %8 = arith.mulf %7, %3 : vector<1x8x128xf32>
    %9 = arith.addf %5, %8 : vector<1x8x128xf32>
    %c0_5 = arith.constant 0 : index
    %c0_6 = arith.constant 0 : index
    %c0_7 = arith.constant 0 : index
    %10 = vector.load %arg6[%c0_5, %c0_6, %c0_7] : memref<1x8x128xf32, #tpu.memory_space<vmem>>, vector<1x8x128xf32>
    tpu.vector_store %arg6[%c0_5, %c0_6, %c0_7], %9 {strides = array<i32>} : memref<1x8x128xf32, #tpu.memory_space<vmem>>, vector<1x8x128xf32>,
    return
  }
  func.func @transform_0(%arg0: i32, %arg1: i32, %arg2: memref<2xi32, #tpu.memory_space<smem>>, %arg3: memref<2xf32, #tpu.memory_space<smem>>) -> (i32, i32, i32) {
    %c0_i32 = arith.constant 0 : i32
    %c0_i32_0 = arith.constant 0 : i32
    return %arg0, %arg1, %c0_i32 : i32, i32, i32
  }
  func.func @transform_1(%arg0: i32, %arg1: i32, %arg2: memref<2xi32, #tpu.memory_space<smem>>, %arg3: memref<2xf32, #tpu.memory_space<smem>>) -> (i32, i32, i32) {
    %0 = arith.index_cast %arg0 : i32 to index
    %1 = memref.load %arg2[%0] : memref<2xi32, #tpu.memory_space<smem>>
    %c0_i32 = arith.constant 0 : i32
    %c0_i32_0 = arith.constant 0 : i32
    return %1, %arg1, %c0_i32 : i32, i32, i32
  }
  func.func @transform_2(%arg0: i32, %arg1: i32, %arg2: memref<2xi32, #tpu.memory_space<smem>>, %arg3: memref<2xf32, #tpu.memory_space<smem>>) -> (i32, i32, i32) {
    %c0_i32 = arith.constant 0 : i32
    %c0_i32_0 = arith.constant 0 : i32
    return %arg0, %arg1, %c0_i32 : i32, i32, i32
  }
}

</mosaic_0001>

<bundles_post_ra>
// kernel: tpu_custom_call.1
= control target key start
LH: loop header
LB: loop body
LE: loop exit
PB: predicated region body
PF: predicated region fallthrough
CT: control target
= control target key end

     0   :  { %s681_s21 = smov [#allocation3]   ;;  %s682_s22 = smov [#allocation4]   ;;  %s935_s0 = inlined_call_operand.hbm [shape: s32[2], index: 0, kind: input, shape index: {}]   ;;  %s936_s2 = inlined_call_operand.hbm [shape: f32[2,8,128], index: 2, kind: input, shape index: {}]   ;;  %s937_s3 = inlined_call_operand.hbm [shape: f32[2,8,128], index: 3, kind: input, shape index: {}]   ;;  %s938_s4 = inlined_call_operand.hbm [shape: f32[2,8,128], index: 4, kind: output, shape index: {}]   ;;  %s939_s1 = inlined_call_operand.hbm [shape: f32[2], index: 1, kind: input, shape index: {}]  }
   0x1   :  { %943 = sst [smem:[#allocation20_spill]] %s936_s2  ;;  %s10_s17 = sshll.u32 %s935_s0, 4  ;;  %s11_s17 = int_to_ptr.hbm [resolvable:$true] %s10_s17 }
   0x2   :  { %s15_s20 = sshll.u32 %s939_s1, 4  ;;  %s16_s20 = int_to_ptr.hbm [resolvable:$true] %s15_s20 }
   0x3   :  { %13 = dma.hbm_to_smem %s11_s17, 16, %s681_s21, [#allocation2] }
   0x4   :  { %18 = dma.hbm_to_smem %s16_s20, 16, %s682_s22, [#allocation2] }
   0x5   :  { %631 = dma.done.wait [#allocation2], 32 }
   0x6   :  { %632 = vsyncadd [#allocation2], 4294967264 }
   0x7   :  { %21 = sfence }
   0x8   :  { %22 = vsyncpa [#allocation6], 0 }
   0x9   :  { %24 = vsyncpa [#allocation6 + $0x1], 0 }
   0xa   :  { %25 = vsyncpa [#allocation9], 0 }
   0xb   :  { %27 = vsyncpa [#allocation9 + $0x1], 0 }
   0xc   :  { %28 = vsyncpa [#allocation7], 0 }
   0xd   :  { %30 = vsyncpa [#allocation7 + $0x1], 0  ;;  %s714_s0 = smov 0   ;;  %s716_s23 = smov 0  }
   0xe   :  { %s718_s1 = smov 0   ;;  %s720_s24 = smov 0  }
   0xf   :  { %s722_s25 = smov 0   ;;  %s724_s26 = smov 0  }
  0x10   :  { %s726_s27 = smov 0   ;;  %s728_s28 = smov 0  }
  0x11   :  { %s730_s29 = smov 0  }
  0x12 LB: > { %944 = sst [smem:[#allocation17_spill]] %s675_s28  ;;  %s370_s30 = sadd.s32 4294967295, %s679_s29   ;;  %s679_s29 = sphi %s730_s29, %s36_s29   ;;  %s675_s28 = sphi %s728_s28, %s962_s28   ;;  %s671_s27 = sphi %s726_s27, %s961_s27   ;;  %s667_s26 = sphi %s724_s26, %s968_s26   ;;  %s663_s25 = sphi %s722_s25, %s967_s25   ;;  %s659_s24 = sphi %s720_s24, %s966_s24   ;;  %s655_s1 = sphi %s718_s1, %s965_s1   ;;  %s651_s23 = sphi %s716_s23, %s964_s23   ;;  %s647_s0 = sphi %s714_s0, %s963_s0  }
  0x13   : > { %s371_s5 = sadd.s32 4294967294, %s679_s29   ;;  %s48_s6 = sadd.s32 1, %s675_s28 }
  0x14   : > { %s57_s7 = sadd.s32 1, %s667_s26  ;;  %p50_p0 = scmp.ge.s32.totalorder %s48_s6, 2 }
  0x15   : > { %p64_p1 = scmp.ne.s32.totalorder %s667_s26, %s663_s25  ;;  %p65_p2 = scmp.eq.s32.totalorder %s679_s29, 0 }
  0x16   : > { %p70_p3 = scmp.ne.s32.totalorder %s663_s25, %s659_s24  ;;  %s970_s6 = smov (%p50_p0, %s48_s6), 0 }
  0x17   : > { %945 = sst [smem:[#allocation18_spill]] %s970_s6  ;;  %p775_p4 = por %p65_p2, %p64_p1 }
  0x18   : > { %p779_p5 = scmp.eq.s32.totalorder %s370_s30, 0  ;;  %s52_s10 = ssub.s32 %s675_s28, %s970_s6 }
  0x19   : > { %s80_s11 = sld [smem:[#allocation3 + %s675_s28]]  ;;  %p55_p6 = scmp.eq.s32.totalorder %s52_s10, 0 }
  0x1a   : > { %p791_p7 = por %p779_p5, %p70_p3  ;;  %s81_s13 = sld [smem:[#allocation3 + %s970_s6]] }
  0x1b   : > { %p126_p8 = scmp.eq.s32.totalorder %s370_s30, 1  ;;  %p132_p10 = scmp.eq.s32.totalorder %s371_s5, 1 }
  0x1c   : > { %s797_s14 = scalar_select %p55_p6, %s667_s26, %s57_s7  }
  0x1d   : > { %p802_p9 = por %p126_p8, %p64_p1  ;;  %p940_p12 = scmp.lt.s32.totalorder %s679_s29, 2 }
  0x1e   : > { %949 = sst [smem:[#allocation19_spill]] %s797_s14  ;;  %p811_p13 = por %p132_p10, %p70_p3 }
  0x1f   : > { %s152_s17 = sand.u32 1, %s667_s26   ;;  %s375_s19 = sshll.u32 %s675_s28, 3 }
  0x20   : > { %s374_s18 = sshll.u32 %s152_s17, 3  ;;  %s952_s2 = sld [smem:[#allocation20_spill]] }
  0x21   : > { %s156_s30 = scalar_lea.vmem [#allocation5], %s374_s18  ;;  %p395_p0 = pnand %p940_p12, %p775_p4 }
  0x22   : > { %s165_s5 = sshll.u32 %s156_s30, 4  ;;  %p378_p1 = scmp.ge.s32.totalorder %s679_s29, 1  ;;  %s166_s5 = int_to_ptr.vmem [resolvable:$true] %s165_s5 }
  0x23   : > { %p191_p3 = scmp.lt.s32.totalorder %s679_s29, 3  ;;  %s153_s10 = scalar_lea.sflag [#allocation6], %s152_s17 }
  0x24   : > { %s87_s20 = sadd.s32 1, %s655_s1  ;;  %p94_p10 = scmp.ne.s32.totalorder %s655_s1, %s651_s23 }
  0x25   : > { %p826_p6 = pnand %p378_p1, %p191_p3  ;;  %p100_p11 = scmp.ne.s32.totalorder %s651_s23, %s647_s0 }
  0x26   : > { %s161_s22 = scalar_lea.hbm %s952_s2, %s375_s19  ;;  %s82_s19 = ssub.s32 %s80_s11, %s81_s13 }
  0x27   : > { %s163_s7 = sshll.u32 %s161_s22, 4  ;;  %p85_p8 = scmp.eq.s32.totalorder %s82_s19, 0  ;;  %s164_s7 = int_to_ptr.hbm [resolvable:$true] %s163_s7 }
  0x28   : > { %397 = dma.hbm_to_vmem [thread:$0]  (!%p395_p0), %s164_s7, 128, %s166_s5, %s153_s10  }
  0x29   : > { %s172_s8 = sand.u32 1, %s655_s1   ;;  %p96_p4 = por %p94_p10, %p65_p2 }
  0x2a   : > { %s837_s21 = scalar_select %p85_p8, %s655_s1, %s87_s20  }
  0x2b   : > { %p843_p12 = por %p100_p11, %p779_p5  ;;  %s376_s22 = sshll.u32 %s172_s8, 3 }
  0x2c   : > { %p955_p0 = scmp.lt.s32.totalorder %s679_s29, 2  ;;  %s176_s5 = scalar_lea.vmem [#allocation8], %s376_s22 }
  0x2d   : > { %s387_s11 = scalar_select %p96_p4, [#allocation3], [#allocation11] }
  0x2e   : > { %p849_p1 = pnand %p955_p0, %p96_p4  ;;  %p957_p3 = pmov %p955_p0 }
  0x2f   : > { %s388_s13 = scalar_select %p96_p4, %s675_s28, 0 }
  0x30   : > { %s972_s11 = smov (!%p957_p3, %s387_s11), [#allocation12]  ;;  %p958_p8 = pmov %p955_p0 }
  0x31   : > { %s186_s9 = sshll.u32 %s176_s5, 4  ;;  %s173_s6 = scalar_lea.sflag [#allocation9], %s172_s8  ;;  %s187_s9 = int_to_ptr.vmem [resolvable:$true] %s186_s9 }
  0x32   : > { %s974_s13 = smov (!%p958_p8, %s388_s13), 0  ;;  %p541_p5 = pneg %p849_p1 }
  0x33   : > { %s177_s0 = sld [smem:[%s972_s11 + %s974_s13]]  ;;  %s544_s13 = scalar_lea.hbm %s937_s3, 16 }
  0x39   : > { %s377_s7 = sshll.u32 %s177_s0, 3 }
  0x3a   : > { %s182_s20 = scalar_lea.hbm %s937_s3, %s377_s7 }
  0x3b   : > { %s184_s2 = sshll.u32 %s182_s20, 4  ;;  %s185_s2 = int_to_ptr.hbm [resolvable:$true] %s184_s2 }
  0x3c   : > { %s537_s14 = sshra.s32 %s185_s2, 4  ;;  %s538_s14 = int_to_ptr.hbm [resolvable:$true] %s537_s14 }
  0x3d   : > { %s539_s28 = scalar_lea.hbm %s538_s14, 8  ;;  %p545_p4 = scmp.lt.s32.totalorder %s538_s14, %s937_s3 }
  0x3e   : > { %p540_p2 = scmp.ne.s32.totalorder %s538_s14, %s539_s28  ;;  %p546_p0 = scmp.lt.s32.totalorder %s544_s13, %s539_s28 }
  0x40   : > { %p542_p11 = pnand %p541_p5, %p540_p2  ;;  %p547_p3 = por %p546_p0, %p545_p4 }
  0x42   : > { %p543_p10 = pneg %p542_p11 }
  0x44   : > { %p548_p8 = pnand %p547_p3, %p543_p10 }
  0x46   : > { %551 = shalt.err (!%p548_p8)
}
  0x47   : > { %402 = dma.hbm_to_vmem [thread:$0]  (!%p849_p1), %s185_s2, 128, %s187_s9, %s173_s6  }
  0x48   : > { %195 = sbr.rel (%p826_p6) target bundleno = 98 (0x62), region = 28  ;;  %s874_s8 = sand.u32 (!%p826_p6), 1, %s663_s25  }
  0x49   : > { %s379_s7 = sshll.u32 (!%p826_p6), %s874_s8, 3  ;;  %s198_s10 = scalar_lea.sflag (!%p826_p6), [#allocation6], %s874_s8 }
  0x4a   : > { %s201_s19 = scalar_lea.vmem (!%p826_p6), [#allocation5], %s379_s7 }
  0x4d   : > { %634 = dma.done.wait (%p791_p7), %s198_s10, 128  }
  0x4e   : > { %636 = vsyncadd (%p791_p7), %s198_s10, 4294967168  ;;  %s207_s2 = sand.u32 1, %s651_s23  }
  0x4f   : > { %s380_s28 = sshll.u32 %s207_s2, 3  ;;  %s208_s6 = scalar_lea.sflag [#allocation9], %s207_s2 }
  0x50   : > { %s211_s14 = scalar_lea.vmem [#allocation8], %s380_s28 }
  0x51   : > { %638 = dma.done.wait (%p843_p12), %s208_s6, 128  }
  0x52   : > { %640 = vsyncadd (%p843_p12), %s208_s6, 4294967168  ;;  %s239_s18 = sld [smem:[#allocation4 + %s671_s27]]  ;;  %s383_s30 = sshll.u32 %s671_s27, 3  ;;  %v240_v0 = vld [vmem:[%s201_s19] sm:$0xff]  ;;  %v241_v1 = vld [vmem:[%s211_s14] sm:$0xff] }
  0x53   : > { %s261_s12 = scalar_lea.hbm %s938_s4, %s383_s30  ;;  %s237_s22 = scalar_lea.vmem [#allocation10], %s379_s7 }
  0x54   : > { %s263_s13 = sshll.u32 %s237_s22, 4  ;;  %s265_s17 = sshll.u32 %s261_s12, 4  ;;  %s264_s13 = int_to_ptr.vmem [resolvable:$true] %s263_s13  ;;  %s266_s17 = int_to_ptr.hbm [resolvable:$true] %s265_s17 }
  0x55   : > { %s250_s27 = scalar_lea.sflag [#allocation7], %s874_s8  ;;  %s581_s0 = sshra.s32 %s266_s17, 4  ;;  %s582_s0 = int_to_ptr.hbm [resolvable:$true] %s581_s0 }
  0x56   : > { %s583_s5 = scalar_lea.hbm %s582_s0, 8  ;;  %s587_s2 = scalar_lea.hbm %s938_s4, 16 }
  0x57   : > { %p584_p7 = scmp.ne.s32.totalorder %s582_s0, %s583_s5  ;;  %p588_p1 = scmp.lt.s32.totalorder %s582_s0, %s938_s4 }
  0x58   : > { %v242_v2 = vstv %s239_s18  ;;  %s244_s11 = ssub.f32 1.0, %s239_s18  ;;  %p589_p2 = scmp.lt.s32.totalorder %s587_s2, %s583_s5 }
  0x59   : > { %v243_v3 = vmul.f32 %v242_v2, %v240_v0  ;;  %p585_p12 = pnand %p584_p7, %p802_p9 }
  0x5a   : > { %v245_v4 = vstv %s244_s11  ;;  %p590_p5 = por %p589_p2, %p588_p1 }
  0x5b   : > { %v246_v5 = vmul.f32 %v245_v4, %v241_v1  ;;  %p586_p6 = pneg %p585_p12 }
  0x5d   : > { %v247_v6 = vadd.f32 %v246_v5, %v243_v3  ;;  %p591_p11 = pnand %p590_p5, %p586_p6 }
  0x5f   : > { %248 = vst [vmem:[%s237_s22] sm:$0xff] %v247_v6 }
  0x60   : > { %594 = shalt.err (!%p591_p11)
}
  0x61   : > { %392 = dma.vmem_to_hbm [thread:$0]  (%p802_p9), %s264_s13, 128, %s266_s17, %s250_s27  }
  0x62 PF: > { %s277_s8 = sand.u32 1, %s659_s24   ;;  %p959_p10 = scmp.ge.s32.totalorder %s679_s29, 2 }
  0x63   : > { %s278_s6 = scalar_lea.sflag [#allocation7], %s277_s8 }
  0x64   : > { %p404_p4 = pnand %p959_p10, %p811_p13 }
  0x66   : > { %p405_p0 = pneg %p404_p4 }
  0x68   : > { %642 = dma.done.wait (%p405_p0), %s278_s6, 128  }
  0x69   : > { %644 = vsyncadd (%p405_p0), %s278_s6, 4294967168  ;;  %s36_s29 = sadd.s32 1, %s679_s29   ;;  %s960_s15 = sld [smem:[#allocation19_spill]] }
  0x6a   : > { %p33_p3 = scmp.ge.s32.totalorder %s36_s29, 4   ;;  %s961_s27 = sld [smem:[#allocation17_spill]] }
  0x6b   : > { %s962_s28 = sld [smem:[#allocation18_spill]]  ;;  %s963_s0 = smov %s651_s23 }
  0x6c   : > { %s964_s23 = smov %s655_s1  ;;  %s965_s1 = smov %s837_s21 }
  0x6d   : > { %s966_s24 = smov %s663_s25  ;;  %s967_s25 = smov %s667_s26 }
  0x6e   :  { %35 = sbr.rel (!%p33_p3) target bundleno = 18 (0x12), region = 86 }
  0x6f   : > { %s968_s26 = smov %s960_s15 }
  0x73   :  { %284 = vsyncpa [#allocation6], 1 }
  0x74   :  { %286 = vsyncpa [#allocation6 + $0x1], 1 }
  0x75   :  { %287 = vsyncpa [#allocation9], 1 }
  0x76   :  { %289 = vsyncpa [#allocation9 + $0x1], 1 }
  0x77   :  { %290 = vsyncpa [#allocation7], 1 }
  0x78   :  { %292 = vsyncpa [#allocation7 + $0x1], 1 }

</bundles_post_ra>
